<compile_context>
chip_gen: v6e
topology: v6e:2x2x1
jax: 0.10.0
libtpu: 0.0.40
codegen_flags: <defaults>
</compile_context>

<pallas_src>
import jax
import jax.numpy as jnp
from jax.experimental import pallas as pl
from jax.experimental.pallas import tpu as pltpu


def mlp_kernel(w1_ref, b1_ref, w2t_ref, b2_ref, x_ref, o_ref):
    # w1_ref : (HID, IN) f32 VMEM, resident across grid steps (PyTorch fc1.weight layout)
    # b1_ref : (HID, 1)  f32 VMEM
    # w2t_ref: (HID, 1)  f32 VMEM (fc2.weight transposed)
    # b2_ref : (1,)      f32 SMEM
    # x_ref  : (IN, TB)  VMEM tile, batch on lanes
    # o_ref  : (1, TB)   VMEM tile, lane-dense output
    hid, in_f = w1_ref.shape
    x = x_ref[...].astype(jnp.float32)            # (IN, TB)
    w1 = w1_ref[...]                              # (HID, IN)

    # fc1 in dense (HID, TB) outer-product form: acc[j, b] = sum_k w1[j, k] * x[k, b].
    # (HID,1)*(1,TB) broadcasts -> sublane-dense vregs instead of 1/8-dense row chains.
    acc = w1[:, 0:1] * x[0:1, :]
    for k in range(1, in_f):                      # IN = 5, fully unrolled
        acc = acc + w1[:, k:k + 1] * x[k:k + 1, :]
    h = jnp.maximum(acc + b1_ref[...], 0.0)       # + bias, ReLU  -> (HID, TB)

    # fc2: per-row weight then sublane reduction (XLU), plus scalar bias.
    out = jnp.sum(w2t_ref[...] * h, axis=0, keepdims=True) + b2_ref[0]   # (1, TB)
    o_ref[...] = out.astype(o_ref.dtype)


def _round_up(n, m):
    return ((n + m - 1) // m) * m


def _pick_batch_tile(batch):
    """Lane-axis tile: big enough to amortize per-grid-step overhead, capped so the
    double-buffered f32 footprint (~128 B/lane) stays < ~8 MiB (safe on v5e's 16 MiB
    default scoped VMEM and v7x's 64 MiB), and split so the grid has >= 2 steps when
    possible (v7x has 2 TensorCores)."""
    lanes = _round_up(batch, 128)
    tile = min(lanes, 64 * 1024)
    if lanes >= 256:
        tile = min(tile, _round_up((lanes + 1) // 2, 128))
    return max(tile, 128)


def simple_nn_forward(x, w1, b1, w2, b2, *, batch_tile=None, force_pallas=False):
    """x: (B, 5); w1: (10, 5); b1: (10,); w2: (1, 10); b2: (1,)  ->  (B, 1)."""
    B, in_f = x.shape
    hid = w1.shape[0]

    # Small-batch fallback: launch + layout overhead dominates below a few thousand rows.
    if not force_pallas and B < 2048:
        return jnp.maximum(x @ w1.T + b1, 0.0) @ w2.T + b2

    if batch_tile is None:
        batch_tile = _pick_batch_tile(B)
    assert batch_tile % 128 == 0, "batch tile must be a multiple of 128 lanes"

    # Feature-major view (batch -> lanes).  Single transpose, no explicit zero-pad:
    # the grid uses cdiv and Pallas masks the (possibly partial) tail block.
    x_t = x.T                                      # (in_f, B)
    grid = (pl.cdiv(B, batch_tile),)

    out_t = pl.pallas_call(
        mlp_kernel,
        out_shape=jax.ShapeDtypeStruct((1, B), x.dtype),
        grid=grid,
        in_specs=[
            pl.BlockSpec((hid, in_f), lambda i: (0, 0)),          # w1   (resident)
            pl.BlockSpec((hid, 1), lambda i: (0, 0)),             # b1 as column
            pl.BlockSpec((hid, 1), lambda i: (0, 0)),             # w2^T as column
            pl.BlockSpec(memory_space=pltpu.MemorySpace.SMEM),    # b2 scalar
            pl.BlockSpec((in_f, batch_tile), lambda i: (0, i)),   # x^T lane tile
        ],
        out_specs=pl.BlockSpec((1, batch_tile), lambda i: (0, i)),
        compiler_params=pltpu.CompilerParams(
            dimension_semantics=("parallel",),
        ),
    )(w1, b1.reshape(hid, 1), w2.T, b2, x_t)

    # Back to PyTorch layout (B, 1).
    return out_t.T


def init_params(key):
    # nn.Linear default init: U(-1/sqrt(fan_in), 1/sqrt(fan_in)); PyTorch weight layout.
    k1, k2, k3, k4 = jax.random.split(key, 4)
    bound1 = 1.0 / jnp.sqrt(5.0)
    bound2 = 1.0 / jnp.sqrt(10.0)
    w1 = jax.random.uniform(k1, (10, 5), jnp.float32, -bound1, bound1)   # fc1.weight
    b1 = jax.random.uniform(k2, (10,), jnp.float32, -bound1, bound1)     # fc1.bias
    w2 = jax.random.uniform(k3, (1, 10), jnp.float32, -bound2, bound2)   # fc2.weight
    b2 = jax.random.uniform(k4, (1,), jnp.float32, -bound2, bound2)      # fc2.bias
    return w1, b1, w2, b2


if __name__ == "__main__":
    key = jax.random.PRNGKey(0)
    kx, kp = jax.random.split(key)
    B = 512                         # small demo batch; auto tile -> 256 lanes, grid = 2
    x = jax.random.normal(kx, (B, 5), jnp.float32)
    w1, b1, w2, b2 = init_params(kp)

    out = simple_nn_forward(x, w1, b1, w2, b2, force_pallas=True)
    jax.block_until_ready(out)

    # Pure-JAX reference (PyTorch semantics: x @ W^T + b), full-precision dots.
    hp = jax.lax.Precision.HIGHEST
    ref = jnp.dot(jnp.maximum(jnp.dot(x, w1.T, precision=hp) + b1, 0.0),
                  w2.T, precision=hp) + b2
    assert out.shape == (B, 1)
    assert jnp.allclose(out, ref, atol=1e-5, rtol=1e-5)

    # Small-batch fallback path (plain fused XLA).
    xs = jax.random.normal(kx, (8, 5), jnp.float32)
    outs = simple_nn_forward(xs, w1, b1, w2, b2)
    refs = jnp.maximum(xs @ w1.T + b1, 0.0) @ w2.T + b2
    assert outs.shape == (8, 1)
    assert jnp.allclose(outs, refs, atol=1e-5, rtol=1e-5)

    print("KERNEL_OK")
</pallas_src>

<mosaic_0001>
module attributes {stable_mosaic.version = 11 : i64} {
  func.func @mlp_kernel(%arg0: i32, %arg1: memref<10x5xf32, #tpu.memory_space<vmem>>, %arg2: memref<10x1xf32, #tpu.memory_space<vmem>>, %arg3: memref<10x1xf32, #tpu.memory_space<vmem>>, %arg4: memref<1xf32, #tpu.memory_space<smem>>, %arg5: memref<5x256xf32, #tpu.memory_space<vmem>>, %arg6: memref<1x256xf32, #tpu.memory_space<vmem>>) attributes {dimension_semantics = [#tpu.dimension_semantics<parallel>], iteration_bounds = array<i64: 2>, scalar_prefetch = 0 : i64, scratch_operands = 0 : i64, tpu.core_type = #tpu.core_type<tc>, window_params = [{pipeline_mode = #tpu.pipeline_mode<synchronous>, transform_indices = @transform_0, window_bounds = array<i64: 10, 5>}, {pipeline_mode = #tpu.pipeline_mode<synchronous>, transform_indices = @transform_1, window_bounds = array<i64: 10, 1>}, {pipeline_mode = #tpu.pipeline_mode<synchronous>, transform_indices = @transform_2, window_bounds = array<i64: 10, 1>}, {transform_indices = @transform_3, window_bounds = array<i64: 1>}, {transform_indices = @transform_4, window_bounds = array<i64: 5, 256>}, {transform_indices = @transform_5, window_bounds = array<i64: 1, 256>}]} {
    %c0 = arith.constant 0 : index
    %c0_0 = arith.constant 0 : index
    %0 = vector.load %arg5[%c0, %c0_0] : memref<5x256xf32, #tpu.memory_space<vmem>>, vector<5x256xf32>
    %c0_1 = arith.constant 0 : index
    %c0_2 = arith.constant 0 : index
    %1 = vector.load %arg1[%c0_1, %c0_2] : memref<10x5xf32, #tpu.memory_space<vmem>>, vector<10x5xf32>
    %2 = vector.extract_strided_slice %1 {offsets = [0, 0], sizes = [10, 1], strides = [1, 1]} : vector<10x5xf32> to vector<10x1xf32>
    %3 = vector.extract_strided_slice %0 {offsets = [0, 0], sizes = [1, 256], strides = [1, 1]} : vector<5x256xf32> to vector<1x256xf32>
    %4 = vector.broadcast %2 : vector<10x1xf32> to vector<10x256xf32>
    %5 = vector.broadcast %3 : vector<1x256xf32> to vector<10x256xf32>
    %6 = arith.mulf %4, %5 : vector<10x256xf32>
    %7 = vector.extract_strided_slice %1 {offsets = [0, 1], sizes = [10, 1], strides = [1, 1]} : vector<10x5xf32> to vector<10x1xf32>
    %8 = vector.extract_strided_slice %0 {offsets = [1, 0], sizes = [1, 256], strides = [1, 1]} : vector<5x256xf32> to vector<1x256xf32>
    %9 = vector.broadcast %7 : vector<10x1xf32> to vector<10x256xf32>
    %10 = vector.broadcast %8 : vector<1x256xf32> to vector<10x256xf32>
    %11 = arith.mulf %9, %10 : vector<10x256xf32>
    %12 = arith.addf %6, %11 : vector<10x256xf32>
    %13 = vector.extract_strided_slice %1 {offsets = [0, 2], sizes = [10, 1], strides = [1, 1]} : vector<10x5xf32> to vector<10x1xf32>
    %14 = vector.extract_strided_slice %0 {offsets = [2, 0], sizes = [1, 256], strides = [1, 1]} : vector<5x256xf32> to vector<1x256xf32>
    %15 = vector.broadcast %13 : vector<10x1xf32> to vector<10x256xf32>
    %16 = vector.broadcast %14 : vector<1x256xf32> to vector<10x256xf32>
    %17 = arith.mulf %15, %16 : vector<10x256xf32>
    %18 = arith.addf %12, %17 : vector<10x256xf32>
    %19 = vector.extract_strided_slice %1 {offsets = [0, 3], sizes = [10, 1], strides = [1, 1]} : vector<10x5xf32> to vector<10x1xf32>
    %20 = vector.extract_strided_slice %0 {offsets = [3, 0], sizes = [1, 256], strides = [1, 1]} : vector<5x256xf32> to vector<1x256xf32>
    %21 = vector.broadcast %19 : vector<10x1xf32> to vector<10x256xf32>
    %22 = vector.broadcast %20 : vector<1x256xf32> to vector<10x256xf32>
    %23 = arith.mulf %21, %22 : vector<10x256xf32>
    %24 = arith.addf %18, %23 : vector<10x256xf32>
    %25 = vector.extract_strided_slice %1 {offsets = [0, 4], sizes = [10, 1], strides = [1, 1]} : vector<10x5xf32> to vector<10x1xf32>
    %26 = vector.extract_strided_slice %0 {offsets = [4, 0], sizes = [1, 256], strides = [1, 1]} : vector<5x256xf32> to vector<1x256xf32>
    %27 = vector.broadcast %25 : vector<10x1xf32> to vector<10x256xf32>
    %28 = vector.broadcast %26 : vector<1x256xf32> to vector<10x256xf32>
    %29 = arith.mulf %27, %28 : vector<10x256xf32>
    %30 = arith.addf %24, %29 : vector<10x256xf32>
    %c0_3 = arith.constant 0 : index
    %c0_4 = arith.constant 0 : index
    %31 = vector.load %arg2[%c0_3, %c0_4] : memref<10x1xf32, #tpu.memory_space<vmem>>, vector<10x1xf32>
    %32 = vector.broadcast %31 : vector<10x1xf32> to vector<10x256xf32>
    %33 = arith.addf %30, %32 : vector<10x256xf32>
    %cst = arith.constant 0.000000e+00 : f32
    %34 = vector.broadcast %cst : f32 to vector<10x256xf32>
    %35 = arith.maximumf %33, %34 : vector<10x256xf32>
    %c0_5 = arith.constant 0 : index
    %c0_6 = arith.constant 0 : index
    %36 = vector.load %arg3[%c0_5, %c0_6] : memref<10x1xf32, #tpu.memory_space<vmem>>, vector<10x1xf32>
    %37 = vector.broadcast %36 : vector<10x1xf32> to vector<10x256xf32>
    %38 = arith.mulf %37, %35 : vector<10x256xf32>
    %cst_7 = arith.constant dense<0.000000e+00> : vector<256xf32>
    %39 = vector.multi_reduction <add>, %38, %cst_7 [0] : vector<10x256xf32> to vector<256xf32>
    %40 = vector.shape_cast %39 : vector<256xf32> to vector<1x256xf32>
    %c0_8 = arith.constant 0 : index
    %41 = memref.load %arg4[%c0_8] : memref<1xf32, #tpu.memory_space<smem>>
    %42 = vector.broadcast %41 : f32 to vector<1x256xf32>
    %43 = arith.addf %40, %42 : vector<1x256xf32>
    %c0_9 = arith.constant 0 : index
    %c0_10 = arith.constant 0 : index
    %44 = vector.load %arg6[%c0_9, %c0_10] : memref<1x256xf32, #tpu.memory_space<vmem>>, vector<1x256xf32>
    tpu.vector_store %arg6[%c0_9, %c0_10], %43 {strides = array<i32>} : memref<1x256xf32, #tpu.memory_space<vmem>>, vector<1x256xf32>,
    return
  }
  func.func @transform_0(%arg0: i32) -> (i32, i32) {
    %c0_i32 = arith.constant 0 : i32
    %c0_i32_0 = arith.constant 0 : i32
    %c0_i32_1 = arith.constant 0 : i32
    return %c0_i32, %c0_i32_0 : i32, i32
  }
  func.func @transform_1(%arg0: i32) -> (i32, i32) {
    %c0_i32 = arith.constant 0 : i32
    %c0_i32_0 = arith.constant 0 : i32
    %c0_i32_1 = arith.constant 0 : i32
    return %c0_i32, %c0_i32_0 : i32, i32
  }
  func.func @transform_2(%arg0: i32) -> (i32, i32) {
    %c0_i32 = arith.constant 0 : i32
    %c0_i32_0 = arith.constant 0 : i32
    %c0_i32_1 = arith.constant 0 : i32
    return %c0_i32, %c0_i32_0 : i32, i32
  }
  func.func @transform_3(%arg0: i32) -> i32 {
    %c0_i32 = arith.constant 0 : i32
    %c0_i32_0 = arith.constant 0 : i32
    return %c0_i32 : i32
  }
  func.func @transform_4(%arg0: i32) -> (i32, i32) {
    %c0_i32 = arith.constant 0 : i32
    %c0_i32_0 = arith.constant 0 : i32
    return %c0_i32, %arg0 : i32, i32
  }
  func.func @transform_5(%arg0: i32) -> (i32, i32) {
    %c0_i32 = arith.constant 0 : i32
    %c0_i32_0 = arith.constant 0 : i32
    return %c0_i32, %arg0 : i32, i32
  }
}

</mosaic_0001>

<bundles_post_ra>
// kernel: tpu_custom_call.1
= control target key start
LH: loop header
LB: loop body
LE: loop exit
PB: predicated region body
PF: predicated region fallthrough
CT: control target
= control target key end

     0   :  { %s788_s0 = inlined_call_operand.vmem [shape: f32[10,5], index: 0, kind: input, shape index: {}]   ;;  %s789_s1 = inlined_call_operand.vmem [shape: f32[10,1], index: 1, kind: input, shape index: {}]   ;;  %s790_s2 = inlined_call_operand.vmem [shape: f32[10,1], index: 2, kind: input, shape index: {}]   ;;  %s791_s3 = inlined_call_operand.<no memory space> [shape: f32[1], index: 3, kind: input, shape index: {}]   ;;  %s792_s4 = inlined_call_operand.vmem [shape: f32[5,512], index: 4, kind: input, shape index: {}]   ;;  %s793_s5 = inlined_call_operand.hbm [shape: f32[1,512], index: 5, kind: output, shape index: {}]  }
   0x1   :  { %10 = sst [smem:[#allocation2]] %s791_s3 }
   0x2   :  { %11 = vsyncpa [#allocation4], 0 }
   0x3   :  { %13 = vsyncpa [#allocation4 + $0x1], 0  ;;  %s674_s20 = smov 0   ;;  %s676_s21 = smov 0  }
   0x4   :  { %s678_s22 = smov 0   ;;  %s680_s23 = smov 0  }
   0x5 LB: > { %s695_s3 = sadd.s32 4294967295, %s632_s23   ;;  %s503_s24 = sadd.s32 4294967294, %s632_s23   ;;  %s632_s23 = sphi %s680_s23, %s799_s23   ;;  %s628_s22 = sphi %s678_s22, %s798_s22   ;;  %s624_s21 = sphi %s676_s21, %s797_s21   ;;  %s620_s20 = sphi %s674_s20, %s796_s20  }
   0x6   : > { %s699_s25 = sadd.s32 1, %s632_s23   ;;  %s136_s26 = sadd.s32 1, %s628_s22 }
   0x7   : > { %s133_s27 = ssub.s32 %s632_s23, %s699_s25  ;;  %p146_p0 = scmp.ne.s32.totalorder %s628_s22, %s624_s21 }
   0x8   : > { %p134_p1 = scmp.eq.s32.totalorder %s133_s27, 0  ;;  %p147_p2 = scmp.eq.s32.totalorder %s695_s3, 1 }
   0x9   : > { %p152_p3 = scmp.ne.s32.totalorder %s624_s21, %s620_s20  ;;  %p153_p4 = scmp.eq.s32.totalorder %s503_s24, 1 }
   0xa   : > { %s710_s28 = scalar_select %p134_p1, %s628_s22, %s136_s26  }
   0xb   : > { %p712_p5 = por %p147_p2, %p146_p0  ;;  %p716_p6 = por %p153_p4, %p152_p3 }
   0xc   : > { %p506_p7 = scmp.ge.s32.totalorder %s632_s23, 1  ;;  %p192_p8 = scmp.lt.s32.totalorder %s632_s23, 3 }
   0xe   : > { %p193_p9 = pnand %p506_p7, %p192_p8 }
   0xf   : > { %s508_s18 = sshll.u32 (!%p193_p9), %s695_s3, 1  ;;  %s402_s6 = sld [smem:[#allocation2]] (!%p193_p9) }
  0x10   : > { %196 = sbr.rel (%p193_p9) target bundleno = 221 (0xdd), region = 40  ;;  %p221_p10 = scmp.lt.s32.totalorder (!%p193_p9), %s508_s18, 3 }
  0x11   : > { %s217_s7 = sand.u32 (!%p193_p9), 1, %s624_s21   ;;  %s515_s9 = sshll.u32 (!%p193_p9), %s695_s3, 5 }
  0x12   : > { %s507_s8 = sshll.u32 (!%p193_p9), %s217_s7, 1  ;;  %s442_s14 = scalar_lea.hbm (!%p193_p9), %s793_s5, %s515_s9 }
  0x13   : > { %s219_s10 = scalar_lea.vmem (!%p193_p9), [#allocation3], %s507_s8  ;;  %s430_s15 = scalar_lea.sflag (!%p193_p9), [#allocation4], %s217_s7 }
  0x14   : > { %s444_s11 = sshll.u32 (!%p193_p9), %s219_s10, 4  ;;  %s640_s17 = smov (!%p193_p9), [#allocation3]   ;;  %s445_s11 = int_to_ptr.vmem [resolvable:$true] %s444_s11 }
  0x15   : > { %v230_v0 = vld [vmem:[%s788_s0 + $0x8] sm:$0x3]  ;;  %v229_v1 = vld [vmem:[%s788_s0] sm:$0xff]  ;;  %v634_v2 = vmov 0   ;;  %v635_v3 = vmov 1   ;;  %v636_v4 = vmov 2   ;;  %v241_v11 = vlaneseq }
  0x16   : > { %563 = vset.pattern.permute.xlu1 %v634_v2  ;;  %561 = vset.pattern.permute.xlu0 %v634_v2  ;;  %v637_v5 = vmov 3   ;;  %v638_v6 = vmov 4   ;;  %v349_v7 = vld [vmem:[%s789_s1] sm:$0xff]  ;;  %v350_v8 = vld [vmem:[%s789_s1 + $0x8] sm:$0x3]  ;;  %s801_s18 = smov (!%p221_p10, %s508_s18), 3 }
  0x17   : > { %238 = vperm.xlu0 %561, %v230_v0   ;;  %233 = vperm.xlu1 %563, %v229_v1   ;;  %v370_v9 = vld [vmem:[%s790_s2 + $0x8] sm:$0x3]  ;;  %v369_v10 = vld [vmem:[%s790_s2] sm:$0xff]  ;;  %s509_s19 = sshll.u32 %s801_s18, 3  ;;  %v742_v13 = vshrl.u32 %v241_v11, 7  ;;  %vm385_vm0 = vcmask 1041408  }
  0x18   : > { %s224_s27 = scalar_lea.vmem %s792_s4, %s509_s19  ;;  %vm426_vm1 = vcmp.lt.s32.totalorder %v241_v11, 256  ;;  %s572_s16 = scalar_lea.vmem %s445_s11, 32 }
  0x19   : > { %v243_v16 = vsub.s32 0, %v742_v13  ;;  %v263_v17 = vsub.s32 1, %v742_v13  ;;  %v227_v18 = vld [vmem:[%s224_s27] sm:$0x1f]  ;;  %v228_v19 = vld [vmem:[%s224_s27 + $0x8] sm:$0x1f]  ;;  %p573_p11 = scmp.ne.s32.totalorder %s445_s11, %s572_s16 }
  0x1a   : > { %v287_v20 = vsub.s32 2, %v742_v13  ;;  %v311_v23 = vsub.s32 3, %v742_v13  ;;  %v335_v38 = vsub.s32 4, %v742_v13  ;;  %s576_s3 = sshll.u32 %s640_s17, 4  ;;  %s577_s3 = int_to_ptr.vmem [resolvable:$false] %s576_s3 }
  0x1b   : > { %562 = vset.pattern.permute.xlu0 %v635_v3  ;;  %564 = vset.pattern.permute.xlu1 %v635_v3  ;;  %v244_v24 = vrot.slane %v227_v18, %v243_v16  ;;  %v248_v25 = vrot.slane %v228_v19, %v243_v16  ;;  %v264_v26 = vrot.slane %v227_v18, %v263_v17  ;;  %p574_p12 = pnand %p573_p11, %p712_p5  ;;  %s578_s18 = scalar_lea.vmem %s577_s3, 64 }
  0x1c   : > { %258 = vperm.xlu0 %562, %v230_v0   ;;  %254 = vperm.xlu1 %564, %v229_v1   ;;  %v268_v27 = vrot.slane %v228_v19, %v263_v17  ;;  %v288_v28 = vrot.slane %v227_v18, %v287_v20  ;;  %v292_v29 = vrot.slane %v228_v19, %v287_v20  ;;  %p579_p0 = scmp.lt.s32.totalorder %s445_s11, %s577_s3  ;;  %p580_p1 = scmp.lt.s32.totalorder %s578_s18, %s572_s16 }
  0x1d   : > { %v312_v36 = vrot.slane %v227_v18, %v311_v23  ;;  %v316_v37 = vrot.slane %v228_v19, %v311_v23  ;;  %v336_v52 = vrot.slane %v227_v18, %v335_v38  ;;  %v340_v53 = vrot.slane %v228_v19, %v335_v38  ;;  %p575_p13 = pneg %p574_p12 }
  0x1e   : > { %p581_p2 = por %p580_p1, %p579_p0 }
  0x20   : > { %566 = vset.pattern.permute.xlu0 %v636_v4  ;;  %565 = vset.pattern.permute.xlu1 %v636_v4  ;;  %p582_p3 = pnand %p581_p2, %p575_p13 }
  0x21   : > { %278 = vperm.xlu0 %566, %v229_v1   ;;  %282 = vperm.xlu1 %565, %v230_v0  }
  0x25   : > { %567 = vset.pattern.permute.xlu1 %v637_v5  ;;  %568 = vset.pattern.permute.xlu0 %v638_v6 }
  0x26   : > { %306 = vperm.xlu1 %567, %v230_v0   ;;  %330 = vperm.xlu0 %568, %v230_v0  }
  0x2a   : > { %302 = vperm.xlu1 %567, %v229_v1   ;;  %571 = vset.pattern.permute.xlu0 %v634_v2 }
  0x2b   : > { %353 = vperm.xlu0 %571, %v349_v7  }
  0x2e   : > { %569 = vset.pattern.permute.xlu1 %v638_v6 }
  0x2f   : > { %326 = vperm.xlu1 %569, %v229_v1  }
  0x33   : > { %570 = vset.pattern.permute.xlu1 %v634_v2 }
  0x34   : > { %358 = vperm.xlu1 %570, %v350_v8  }
  0x38   : > { %378 = vperm.xlu1 %570, %v370_v9  }
  0x3c   : > { %373 = vperm.xlu1 %570, %v369_v10  }
  0x92   : > { %v234_v12 = vpop.permute.xlu1 %233  ;;  %v239_v14 = vpop.permute.xlu0 %238 }
  0x93   : > { %v251_v30 = vmul.f32 %v244_v24, %v239_v14  ;;  %v252_v31 = vmul.f32 %v248_v25, %v239_v14  ;;  %v249_v45 = vmul.f32 %v244_v24, %v234_v12  ;;  %v250_v46 = vmul.f32 %v248_v25, %v234_v12 }
  0x97   : > { %v255_v15 = vpop.permute.xlu1 %254  ;;  %v259_v21 = vpop.permute.xlu0 %258 }
  0x98   : > { %v271_v32 = vmul.f32 %v264_v26, %v259_v21  ;;  %v272_v33 = vmul.f32 %v268_v27, %v259_v21  ;;  %v269_v39 = vmul.f32 %v264_v26, %v255_v15  ;;  %v270_v40 = vmul.f32 %v268_v27, %v255_v15 }
  0x9a   : > { %v275_v41 = vadd.f32 %v271_v32, %v251_v30  ;;  %v276_v42 = vadd.f32 %v272_v33, %v252_v31  ;;  %v273_v54 = vadd.f32 %v269_v39, %v249_v45  ;;  %v274_v55 = vadd.f32 %v270_v40, %v250_v46 }
  0x9b   : > { %v639_v40 = vmov 1966171168  }
  0x9c   : > { %v283_v22 = vpop.permute.xlu1 %282  ;;  %v279_v35 = vpop.permute.xlu0 %278 }
  0x9d   : > { %v295_v43 = vmul.f32 %v288_v28, %v283_v22  ;;  %v296_v44 = vmul.f32 %v292_v29, %v283_v22  ;;  %v293_v47 = vmul.f32 %v288_v28, %v279_v35  ;;  %v294_v48 = vmul.f32 %v292_v29, %v279_v35 }
  0x9f   : > { %v299_v57 = vadd.f32 %v295_v43, %v275_v41  ;;  %v300_v58 = vadd.f32 %v296_v44, %v276_v42  ;;  %v297_v61 = vadd.f32 %v293_v47, %v273_v54  ;;  %v298_v62 = vadd.f32 %v294_v48, %v274_v55 }
  0xa0   : > { %v410_v41 = vunpack.c.l.s4 %v639_v40  ;;  %v403_v47 = vstv %s402_s6 }
  0xa1   : > { %v307_v34 = vpop.permute.xlu1 %306  ;;  %v331_v56 = vpop.permute.xlu0 %330 }
  0xa2   : > { %v319_v50 = vmul.f32 %v312_v36, %v307_v34  ;;  %v320_v51 = vmul.f32 %v316_v37, %v307_v34  ;;  %v343_v1 = vmul.f32 %v336_v52, %v331_v56  ;;  %v344_v2 = vmul.f32 %v340_v53, %v331_v56 }
  0xa3   : > { %v411_v46 = vunpack.c.0.s8 %v410_v41 }
  0xa4   : > { %v323_v63 = vadd.f32 %v319_v50, %v299_v57  ;;  %v324_v0 = vadd.f32 %v320_v51, %v300_v58 }
  0xa5   : > { %v303_v49 = vpop.permute.xlu1 %302 }
  0xa6   : > { %v317_v59 = vmul.f32 %v312_v36, %v303_v49  ;;  %v318_v60 = vmul.f32 %v316_v37, %v303_v49  ;;  %v347_v10 = vadd.f32 %v343_v1, %v323_v63  ;;  %v348_v12 = vadd.f32 %v344_v2, %v324_v0  ;;  %v354_v14 = vpop.permute.xlu0 %353 }
  0xa8   : > { %v321_v6 = vadd.f32 %v317_v59, %v297_v61  ;;  %v322_v7 = vadd.f32 %v318_v60, %v298_v62 }
  0xaa   : > { %v327_v3 = vpop.permute.xlu1 %326 }
  0xab   : > { %v341_v4 = vmul.f32 %v336_v52, %v327_v3  ;;  %v342_v5 = vmul.f32 %v340_v53, %v327_v3  ;;  %v414_v52 = vsub.s32 %v411_v46, %v742_v13 }
  0xad   : > { %v345_v8 = vadd.f32 %v341_v4, %v321_v6  ;;  %v346_v9 = vadd.f32 %v342_v5, %v322_v7 }
  0xaf   : > { %v359_v15 = vpop.permute.xlu1 %358  ;;  %v361_v18 = vadd.f32 %v354_v14, %v345_v8  ;;  %v362_v19 = vadd.f32 %v354_v14, %v346_v9 }
  0xb0   : > { %v363_v16 = vadd.f32 %v359_v15, %v347_v10  ;;  %v364_v17 = vadd.f32 %v359_v15, %v348_v12 }
  0xb1   : > { %v365_v25 = vmax.f32 %v361_v18, 0.0  ;;  %v366_v26 = vmax.f32 %v362_v19, 0.0 }
  0xb2   : > { %v367_v20 = vmax.f32 %v363_v16, 0.0  ;;  %v368_v21 = vmax.f32 %v364_v17, 0.0 }
  0xb3   : > { %v379_v22 = vpop.permute.xlu1 %378 }
  0xb4   : > { %v383_v23 = vmul.f32 %v379_v22, %v367_v20  ;;  %v384_v24 = vmul.f32 %v379_v22, %v368_v21 }
  0xb6   : > { %v386_v30 = vsel %vm385_vm0, %v383_v23, 0.0  ;;  %v394_v31 = vsel %vm385_vm0, %v384_v24, 0.0 }
  0xb7   : > { %v374_v27 = vpop.permute.xlu1 %373 }
  0xb8   : > { %v381_v28 = vmul.f32 %v374_v27, %v365_v25  ;;  %v382_v29 = vmul.f32 %v374_v27, %v366_v26 }
  0xba   : > { %v387_v32 = vadd.f32 %v386_v30, %v381_v28  ;;  %v395_v33 = vadd.f32 %v394_v31, %v382_v29 }
  0xbc   : > { %v388_v34 = vrot.slane %v387_v32, 4  ;;  %v396_v35 = vrot.slane %v395_v33, 4 }
  0xbe   : > { %v389_v36 = vadd.f32 %v388_v34, %v387_v32  ;;  %v397_v37 = vadd.f32 %v396_v35, %v395_v33 }
  0xc0   : > { %v390_v38 = vrot.slane %v389_v36, 2  ;;  %v398_v39 = vrot.slane %v397_v37, 2 }
  0xc2   : > { %v391_v42 = vadd.f32 %v390_v38, %v389_v36  ;;  %v399_v43 = vadd.f32 %v398_v39, %v397_v37 }
  0xc4   : > { %v392_v44 = vrot.slane %v391_v42, 1  ;;  %v400_v45 = vrot.slane %v399_v43, 1 }
  0xc6   : > { %v393_v48 = vadd.f32 %v392_v44, %v391_v42  ;;  %v401_v49 = vadd.f32 %v400_v45, %v399_v43 }
  0xc8   : > { %v404_v50 = vadd.f32 %v403_v47, %v393_v48  ;;  %v405_v51 = vadd.f32 %v403_v47, %v401_v49 }
  0xca   : > { %v408_v53 = vcombine.low %v404_v50, %v405_v51 }
  0xcc   : > { %v415_v54 = vrot.slane %v408_v53, %v414_v52 }
  0xce   : > { %v422_v55 = vrot.slane %v415_v54, %v414_v52 }
  0xd0   : > { %428 = vst.msk [vmem:[%s219_s10] sm:$0x3] %vm426_vm1, %v422_v55 }
  0xd1   : > { %585 = shalt.err (!%p582_p3)
}
  0xd2   : > { %s586_s19 = scalar_lea.hbm %s442_s14, 32  ;;  %s590_s27 = scalar_lea.hbm %s793_s5, 64 }
  0xd3   : > { %p587_p4 = scmp.ne.s32.totalorder %s442_s14, %s586_s19  ;;  %p591_p9 = scmp.lt.s32.totalorder %s442_s14, %s793_s5 }
  0xd4   : > { %p592_p10 = scmp.lt.s32.totalorder %s590_s27, %s586_s19 }
  0xd5   : > { %p588_p7 = pnand %p587_p4, %p712_p5 }
  0xd6   : > { %p593_p11 = por %p592_p10, %p591_p9 }
  0xd7   : > { %p589_p8 = pneg %p588_p7 }
  0xd9   : > { %p594_p12 = pnand %p593_p11, %p589_p8 }
  0xdb   : > { %597 = shalt.err (!%p594_p12)
}
  0xdc   : > { %516 = dma.vmem_to_hbm [thread:$0]  (%p712_p5), %s445_s11, 32, %s442_s14, %s430_s15  }
  0xdd PF: > { %p522_p13 = scmp.ge.s32.totalorder %s632_s23, 2  ;;  %s456_s8 = sand.u32 1, %s620_s20  }
  0xde   : > { %s457_s9 = scalar_lea.sflag [#allocation4], %s456_s8 }
  0xdf   : > { %p519_p0 = pnand %p522_p13, %p716_p6 }
  0xe1   : > { %p520_p1 = pneg %p519_p0 }
  0xe3   : > { %615 = dma.done.wait (%p520_p1), %s457_s9, 32  }
  0xe4   : > { %617 = vsyncadd (%p520_p1), %s457_s9, 4294967264  ;;  %p16_p2 = scmp.ge.s32.totalorder %s699_s25, 4   ;;  %s796_s20 = smov %s624_s21 }
  0xe5   : > { %s797_s21 = smov %s628_s22  ;;  %s798_s22 = smov %s710_s28 }
  0xe6   : > { %s799_s23 = smov %s699_s25  ;;  %18 = sbr.rel (!%p16_p2) target bundleno = 5 (0x5), region = 75 }
  0xeb   :  { %462 = vsyncpa [#allocation4], 1 }
  0xec   :  { %464 = vsyncpa [#allocation4 + $0x1], 1 }

</bundles_post_ra>
